<compile_context>
chip_gen: v5e
topology: v5e:2x2
jax: 0.10.0
libtpu: 0.0.40
codegen_flags: <defaults>
</compile_context>

<pallas_src>
import functools

import jax
import jax.numpy as jnp
from jax.experimental import pallas as pl
from jax.experimental.pallas import tpu as pltpu

NEG_SLOPE = 0.01   # nn.LeakyReLU default
BN_EPS = 1e-5      # nn.BatchNorm1d default

_SMALL_BATCH = 2048      # below this, one grid step (per-step overhead dominates)
_MAX_TILE_ROWS = 16384   # per-step row cap (keeps f32 intermediates ~2-8 MiB)


def _leaky_relu(x):
    return jnp.where(x > 0, x, NEG_SLOPE * x)


def _round_up(n, m):
    return (n + m - 1) // m * m


def _choose_tile(n):
    """Adaptive batch tile.

    * n <= _SMALL_BATCH: one grid step with block dim == full array dim
      (exempt from the sublane-8 divisibility rule), eliminating all extra
      per-step overhead on single-TC chips (v5e/v6e) where there is nothing
      to parallelize anyway.
    * larger n: an even number of tiles so the "parallel" grid axis can be
      sharded across v7x's two TensorCores; tiles are multiples of 8 rows
      (sublane rule) and capped at _MAX_TILE_ROWS.
    """
    if n <= _SMALL_BATCH:
        return n
    n_tiles = 2 * pl.cdiv(n, 2 * _MAX_TILE_ROWS)      # even tile count for megacore
    return _round_up(pl.cdiv(n, n_tiles), 8)


# ----------------------------------------------------------------------------
# Kernel
# ----------------------------------------------------------------------------
def _forward_kernel(
    xf_ref,      # (TILE_N, 9)  f32/bf16  flattened 1x3x3 patch tile
    wc_ref,      # (9,  sz)     bf16      conv-as-matmul weight
    w1_ref,      # (sz, sz)     bf16      Linear1 with BN1 folded in
    w2_ref,      # (sz, sz)     bf16      Linear2 with BN2 folded in
    consts_ref,  # (5,  sz)     f32       rows: [conv_b, b1_fold, b2_fold, w3_row, (b3,0..)]
    out_ref,     # (TILE_N, 1)  f32
):
    xf = xf_ref[...].astype(jnp.bfloat16)   # no-op if the producer already gave bf16

    bc = consts_ref[0:1, :]                  # (1, sz) f32
    b1 = consts_ref[1:2, :]
    b2 = consts_ref[2:3, :]
    w3 = consts_ref[3:4, :]                  # final Linear weight as a row
    b3 = consts_ref[4:5, 0:1]                # (1, 1)

    # Conv2d(1, sz, k=3) on a 3x3 input == matmul over the flattened patch.
    h = jnp.dot(xf, wc_ref[...], preferred_element_type=jnp.float32) + bc
    h = _leaky_relu(h)                       # (TILE_N, sz) f32

    # Linear + folded eval-mode BatchNorm, LeakyReLU (Dropout == identity in eval).
    h = jnp.dot(h.astype(jnp.bfloat16), w1_ref[...],
                preferred_element_type=jnp.float32) + b1
    h = _leaky_relu(h)

    h = jnp.dot(h.astype(jnp.bfloat16), w2_ref[...],
                preferred_element_type=jnp.float32) + b2
    h = _leaky_relu(h)

    # Final Linear(sz, 1): VPU broadcast-multiply + XLU lane reduction instead of
    # a 1-column MXU matmul (MXU would use 1/256 of its width and add a serial
    # push/pop tail per tile; VPU/XLU slots are idle at this problem size).
    out = jnp.sum(h * w3, axis=-1, keepdims=True) + b3
    out_ref[...] = out.astype(out_ref.dtype)


# ----------------------------------------------------------------------------
# Wrapper
# ----------------------------------------------------------------------------
@functools.partial(jax.jit, static_argnames=("tile_n",))
def three_by_three_forward(x, kparams, *, tile_n=None):
    """x: (N, 1, 3, 3) f32 or bf16, NCHW.  kparams: output of fold_params.  -> (N, 1) f32."""
    N = x.shape[0]
    assert x.shape[1:] == (1, 3, 3), "module requires 1x3x3 single-channel inputs"

    wc = kparams["wc"]
    w1 = kparams["w1"]
    w2 = kparams["w2"]
    consts = kparams["consts"]
    sz = w1.shape[0]

    # Reshape only — no pad copy, no standalone dtype cast (both would add an
    # extra full HBM pass over the dominant input stream before the kernel).
    xf = x.reshape(N, 9)
    x_bytes = xf.dtype.itemsize

    tn = tile_n if tile_n is not None else _choose_tile(N)
    n_tiles = pl.cdiv(N, tn)

    # Computed VMEM budget: double-buffered I/O tiles, resident weights
    # (budgeted x2 for pipeline buffering), packed consts, and generous headroom
    # for the compiler's f32/bf16 (tile_n, sz) intermediates.
    vmem_bytes = (2 * tn * 9 * x_bytes                     # input tiles (double buffered)
                  + 2 * tn * 4                             # output tiles
                  + 2 * (9 * sz + 2 * sz * sz) * 2         # bf16 weights
                  + 2 * 5 * sz * 4                         # packed f32 consts
                  + 8 * tn * sz * 4)                       # intermediate headroom
    vmem_limit = int(min(112 * 1024 * 1024, max(4 * 1024 * 1024, vmem_bytes)))

    weight_bytes = (9 * sz + 2 * sz * sz + sz) * 2 + 5 * sz * 4
    cost = pl.CostEstimate(
        flops=2 * N * (9 * sz + 2 * sz * sz + sz),
        transcendentals=0,
        bytes_accessed=N * (9 * x_bytes + 4) + weight_bytes,
    )

    out = pl.pallas_call(
        _forward_kernel,
        out_shape=jax.ShapeDtypeStruct((N, 1), jnp.float32),
        grid=(n_tiles,),
        in_specs=[
            pl.BlockSpec((tn, 9),  lambda i: (i, 0)),   # streamed batch tile
            pl.BlockSpec((9, sz),  lambda i: (0, 0)),   # resident weights
            pl.BlockSpec((sz, sz), lambda i: (0, 0)),
            pl.BlockSpec((sz, sz), lambda i: (0, 0)),
            pl.BlockSpec((5, sz),  lambda i: (0, 0)),   # packed biases + w3 row
        ],
        out_specs=pl.BlockSpec((tn, 1), lambda i: (i, 0)),
        compiler_params=pltpu.CompilerParams(
            dimension_semantics=("parallel",),          # megacore split on v7x
            vmem_limit_bytes=vmem_limit,
        ),
        cost_estimate=cost,
    )(xf, wc, w1, w2, consts)

    return out


# ----------------------------------------------------------------------------
# Parameter handling (torch-layout params -> folded/packed kernel operands)
# ----------------------------------------------------------------------------
def init_params(key, sz):
    """Synthetic parameters, shaped exactly like the nn.Module's tensors."""
    ks = jax.random.split(key, 12)

    def u(k, shape, fan_in):
        bound = 1.0 / jnp.sqrt(fan_in)
        return jax.random.uniform(k, shape, jnp.float32, -bound, bound)

    return dict(
        conv_w=u(ks[0], (sz, 1, 3, 3), 9),   # Conv2d weight (out, in, kh, kw)
        conv_b=u(ks[1], (sz,), 9),
        w1=u(ks[2], (sz, sz), sz),           # Linear weight (out, in)
        b1=u(ks[3], (sz,), sz),
        w2=u(ks[4], (sz, sz), sz),
        b2=u(ks[5], (sz,), sz),
        w3=u(ks[6], (1, sz), sz),
        b3=u(ks[7], (1,), sz),
        # BatchNorm1d affine params + (perturbed) running stats
        g1=jnp.ones((sz,), jnp.float32),
        be1=jnp.zeros((sz,), jnp.float32),
        rm1=0.1 * jax.random.normal(ks[8], (sz,), jnp.float32),
        rv1=1.0 + 0.05 * jax.random.uniform(ks[9], (sz,), jnp.float32),
        g2=jnp.ones((sz,), jnp.float32),
        be2=jnp.zeros((sz,), jnp.float32),
        rm2=0.1 * jax.random.normal(ks[10], (sz,), jnp.float32),
        rv2=1.0 + 0.05 * jax.random.uniform(ks[11], (sz,), jnp.float32),
    )


def fold_params(p, mxu_dtype=jnp.bfloat16):
    """Fold eval-mode BN into the linears, transpose to (in, out), pack f32 consts."""
    sz = p["conv_w"].shape[0]

    wc = p["conv_w"].reshape(sz, 9).T            # (9, sz): conv == xf @ wc
    bc = p["conv_b"]

    s1 = p["g1"] * jax.lax.rsqrt(p["rv1"] + BN_EPS)
    w1 = p["w1"].T * s1[None, :]                 # (in, out), scaled per out-feature
    b1 = (p["b1"] - p["rm1"]) * s1 + p["be1"]

    s2 = p["g2"] * jax.lax.rsqrt(p["rv2"] + BN_EPS)
    w2 = p["w2"].T * s2[None, :]
    b2 = (p["b2"] - p["rm2"]) * s2 + p["be2"]

    consts = jnp.zeros((5, sz), jnp.float32)
    consts = consts.at[0].set(bc)
    consts = consts.at[1].set(b1)
    consts = consts.at[2].set(b2)
    consts = consts.at[3].set(p["w3"][0])        # final Linear weight as a row (VPU path)
    consts = consts.at[4, 0].set(p["b3"][0])

    return dict(
        wc=wc.astype(mxu_dtype),
        w1=w1.astype(mxu_dtype),
        w2=w2.astype(mxu_dtype),
        consts=consts,
    )


def reference_forward(x, p):
    """Pure-JAX f32 reference with explicit (un-folded) eval-mode BatchNorm."""
    N = x.shape[0]
    sz = p["conv_w"].shape[0]
    xf = x.reshape(N, 9)

    h = _leaky_relu(xf @ p["conv_w"].reshape(sz, 9).T + p["conv_b"][None, :])

    h = h @ p["w1"].T + p["b1"][None, :]
    h = (h - p["rm1"]) * jax.lax.rsqrt(p["rv1"] + BN_EPS) * p["g1"] + p["be1"]
    h = _leaky_relu(h)

    h = h @ p["w2"].T + p["b2"][None, :]
    h = (h - p["rm2"]) * jax.lax.rsqrt(p["rv2"] + BN_EPS) * p["g2"] + p["be2"]
    h = _leaky_relu(h)

    return h @ p["w3"].T + p["b3"][None, :]


if __name__ == "__main__":
    SZ = 32         # out_channels / hidden size
    N = 64          # small batch -> single grid step (tile_n == N)

    key = jax.random.PRNGKey(0)
    k_x, k_p = jax.random.split(key)
    x = jax.random.normal(k_x, (N, 1, 3, 3), jnp.float32)

    raw_params = init_params(k_p, SZ)
    kernel_params = fold_params(raw_params)

    out = three_by_three_forward(x, kernel_params)
    out = jax.block_until_ready(out)

    ref = reference_forward(x, raw_params)
    assert out.shape == (N, 1)
    # bf16 MXU operands (f32 accumulate) -> small numeric drift vs f32 reference.
    assert jnp.allclose(out, ref, atol=2e-2, rtol=2e-2), "mismatch vs reference"

    print("KERNEL_OK")
</pallas_src>

<mosaic_0001>
module attributes {stable_mosaic.version = 11 : i64} {
  func.func @_forward_kernel(%arg0: i32, %arg1: memref<64x9xf32, #tpu.memory_space<vmem>>, %arg2: memref<9x32xbf16, #tpu.memory_space<vmem>>, %arg3: memref<32x32xbf16, #tpu.memory_space<vmem>>, %arg4: memref<32x32xbf16, #tpu.memory_space<vmem>>, %arg5: memref<5x32xf32, #tpu.memory_space<vmem>>, %arg6: memref<64x1xf32, #tpu.memory_space<vmem>>) attributes {dimension_semantics = [#tpu.dimension_semantics<parallel>], iteration_bounds = array<i64: 1>, scalar_prefetch = 0 : i64, scratch_operands = 0 : i64, tpu.core_type = #tpu.core_type<tc>, window_params = [{transform_indices = @transform_0, window_bounds = array<i64: 64, 9>}, {pipeline_mode = #tpu.pipeline_mode<synchronous>, transform_indices = @transform_1, window_bounds = array<i64: 9, 32>}, {pipeline_mode = #tpu.pipeline_mode<synchronous>, transform_indices = @transform_2, window_bounds = array<i64: 32, 32>}, {pipeline_mode = #tpu.pipeline_mode<synchronous>, transform_indices = @transform_3, window_bounds = array<i64: 32, 32>}, {pipeline_mode = #tpu.pipeline_mode<synchronous>, transform_indices = @transform_4, window_bounds = array<i64: 5, 32>}, {transform_indices = @transform_5, window_bounds = array<i64: 64, 1>}]} {
    %c0 = arith.constant 0 : index
    %c0_0 = arith.constant 0 : index
    %0 = vector.load %arg1[%c0, %c0_0] : memref<64x9xf32, #tpu.memory_space<vmem>>, vector<64x9xf32>
    %1 = arith.truncf %0 : vector<64x9xf32> to vector<64x9xbf16>
    %c0_1 = arith.constant 0 : index
    %c0_2 = arith.constant 0 : index
    %2 = vector.load %arg5[%c0_1, %c0_2] : memref<5x32xf32, #tpu.memory_space<vmem>>, vector<1x32xf32>
    %c1 = arith.constant 1 : index
    %c0_3 = arith.constant 0 : index
    %3 = vector.load %arg5[%c1, %c0_3] : memref<5x32xf32, #tpu.memory_space<vmem>>, vector<1x32xf32>
    %c2 = arith.constant 2 : index
    %c0_4 = arith.constant 0 : index
    %4 = vector.load %arg5[%c2, %c0_4] : memref<5x32xf32, #tpu.memory_space<vmem>>, vector<1x32xf32>
    %c3 = arith.constant 3 : index
    %c0_5 = arith.constant 0 : index
    %5 = vector.load %arg5[%c3, %c0_5] : memref<5x32xf32, #tpu.memory_space<vmem>>, vector<1x32xf32>
    %c4 = arith.constant 4 : index
    %c0_6 = arith.constant 0 : index
    %6 = vector.load %arg5[%c4, %c0_6] : memref<5x32xf32, #tpu.memory_space<vmem>>, vector<1x1xf32>
    %c0_7 = arith.constant 0 : index
    %c0_8 = arith.constant 0 : index
    %7 = vector.load %arg2[%c0_7, %c0_8] : memref<9x32xbf16, #tpu.memory_space<vmem>>, vector<9x32xbf16>
    %cst = arith.constant dense<0.000000e+00> : vector<64x32xf32>
    %8 = tpu.matmul %1, %7, %cst {dimension_numbers = #tpu.dot_dimension_numbers<[1], [0], [0], [1], [0, 0, 1, 1], [], []>} : vector<64x9xbf16>, vector<9x32xbf16>, vector<64x32xf32> -> vector<64x32xf32>
    %9 = vector.broadcast %2 : vector<1x32xf32> to vector<64x32xf32>
    %10 = arith.addf %8, %9 : vector<64x32xf32>
    %cst_9 = arith.constant 0.000000e+00 : f32
    %11 = vector.broadcast %cst_9 : f32 to vector<64x32xf32>
    %12 = arith.cmpf ogt, %10, %11 : vector<64x32xf32>
    %cst_10 = arith.constant 0.00999999977 : f32
    %13 = vector.broadcast %cst_10 : f32 to vector<64x32xf32>
    %14 = arith.mulf %13, %10 : vector<64x32xf32>
    %15 = arith.select %12, %10, %14 : vector<64x32xi1>, vector<64x32xf32>
    %16 = arith.truncf %15 : vector<64x32xf32> to vector<64x32xbf16>
    %c0_11 = arith.constant 0 : index
    %c0_12 = arith.constant 0 : index
    %17 = vector.load %arg3[%c0_11, %c0_12] : memref<32x32xbf16, #tpu.memory_space<vmem>>, vector<32x32xbf16>
    %cst_13 = arith.constant dense<0.000000e+00> : vector<64x32xf32>
    %18 = tpu.matmul %16, %17, %cst_13 {dimension_numbers = #tpu.dot_dimension_numbers<[1], [0], [0], [1], [0, 0, 1, 1], [], []>} : vector<64x32xbf16>, vector<32x32xbf16>, vector<64x32xf32> -> vector<64x32xf32>
    %19 = vector.broadcast %3 : vector<1x32xf32> to vector<64x32xf32>
    %20 = arith.addf %18, %19 : vector<64x32xf32>
    %cst_14 = arith.constant 0.000000e+00 : f32
    %21 = vector.broadcast %cst_14 : f32 to vector<64x32xf32>
    %22 = arith.cmpf ogt, %20, %21 : vector<64x32xf32>
    %cst_15 = arith.constant 0.00999999977 : f32
    %23 = vector.broadcast %cst_15 : f32 to vector<64x32xf32>
    %24 = arith.mulf %23, %20 : vector<64x32xf32>
    %25 = arith.select %22, %20, %24 : vector<64x32xi1>, vector<64x32xf32>
    %26 = arith.truncf %25 : vector<64x32xf32> to vector<64x32xbf16>
    %c0_16 = arith.constant 0 : index
    %c0_17 = arith.constant 0 : index
    %27 = vector.load %arg4[%c0_16, %c0_17] : memref<32x32xbf16, #tpu.memory_space<vmem>>, vector<32x32xbf16>
    %cst_18 = arith.constant dense<0.000000e+00> : vector<64x32xf32>
    %28 = tpu.matmul %26, %27, %cst_18 {dimension_numbers = #tpu.dot_dimension_numbers<[1], [0], [0], [1], [0, 0, 1, 1], [], []>} : vector<64x32xbf16>, vector<32x32xbf16>, vector<64x32xf32> -> vector<64x32xf32>
    %29 = vector.broadcast %4 : vector<1x32xf32> to vector<64x32xf32>
    %30 = arith.addf %28, %29 : vector<64x32xf32>
    %cst_19 = arith.constant 0.000000e+00 : f32
    %31 = vector.broadcast %cst_19 : f32 to vector<64x32xf32>
    %32 = arith.cmpf ogt, %30, %31 : vector<64x32xf32>
    %cst_20 = arith.constant 0.00999999977 : f32
    %33 = vector.broadcast %cst_20 : f32 to vector<64x32xf32>
    %34 = arith.mulf %33, %30 : vector<64x32xf32>
    %35 = arith.select %32, %30, %34 : vector<64x32xi1>, vector<64x32xf32>
    %36 = vector.broadcast %5 : vector<1x32xf32> to vector<64x32xf32>
    %37 = arith.mulf %35, %36 : vector<64x32xf32>
    %cst_21 = arith.constant dense<0.000000e+00> : vector<64xf32>
    %38 = vector.multi_reduction <add>, %37, %cst_21 [1] : vector<64x32xf32> to vector<64xf32>
    %39 = vector.shape_cast %38 : vector<64xf32> to vector<64x1xf32>
    %40 = vector.broadcast %6 : vector<1x1xf32> to vector<64x1xf32>
    %41 = arith.addf %39, %40 : vector<64x1xf32>
    %c0_22 = arith.constant 0 : index
    %c0_23 = arith.constant 0 : index
    %42 = vector.load %arg6[%c0_22, %c0_23] : memref<64x1xf32, #tpu.memory_space<vmem>>, vector<64x1xf32>
    tpu.vector_store %arg6[%c0_22, %c0_23], %41 {strides = array<i32>} : memref<64x1xf32, #tpu.memory_space<vmem>>, vector<64x1xf32>,
    return
  }
  func.func @transform_0(%arg0: i32) -> (i32, i32) {
    %c0_i32 = arith.constant 0 : i32
    %c0_i32_0 = arith.constant 0 : i32
    return %arg0, %c0_i32 : i32, i32
  }
  func.func @transform_1(%arg0: i32) -> (i32, i32) {
    %c0_i32 = arith.constant 0 : i32
    %c0_i32_0 = arith.constant 0 : i32
    %c0_i32_1 = arith.constant 0 : i32
    return %c0_i32, %c0_i32_0 : i32, i32
  }
  func.func @transform_2(%arg0: i32) -> (i32, i32) {
    %c0_i32 = arith.constant 0 : i32
    %c0_i32_0 = arith.constant 0 : i32
    %c0_i32_1 = arith.constant 0 : i32
    return %c0_i32, %c0_i32_0 : i32, i32
  }
  func.func @transform_3(%arg0: i32) -> (i32, i32) {
    %c0_i32 = arith.constant 0 : i32
    %c0_i32_0 = arith.constant 0 : i32
    %c0_i32_1 = arith.constant 0 : i32
    return %c0_i32, %c0_i32_0 : i32, i32
  }
  func.func @transform_4(%arg0: i32) -> (i32, i32) {
    %c0_i32 = arith.constant 0 : i32
    %c0_i32_0 = arith.constant 0 : i32
    %c0_i32_1 = arith.constant 0 : i32
    return %c0_i32, %c0_i32_0 : i32, i32
  }
  func.func @transform_5(%arg0: i32) -> (i32, i32) {
    %c0_i32 = arith.constant 0 : i32
    %c0_i32_0 = arith.constant 0 : i32
    return %arg0, %c0_i32 : i32, i32
  }
}

</mosaic_0001>

<bundles_post_ra>
// kernel: three_by_three_forward.1
= control target key start
LH: loop header
LB: loop body
LE: loop exit
PB: predicated region body
PF: predicated region fallthrough
CT: control target
= control target key end

     0   :  { %vm59_vm0 = vcmask 1043456   ;;  %vm60_vm1 = vcmask 1044480   ;;  %v394_v2 = vmov 65535   ;;  %vm46_vm2 = vcmask 72704   ;;  %s530_s1 = inlined_call_operand.vmem [shape: bf16[9,32], index: 1, kind: input, shape index: {}]   ;;  %s531_s0 = inlined_call_operand.vmem [shape: f32[64,9], index: 0, kind: input, shape index: {}]   ;;  %s532_s4 = inlined_call_operand.vmem [shape: f32[5,32], index: 4, kind: input, shape index: {}]   ;;  %s533_s2 = inlined_call_operand.vmem [shape: bf16[32,32], index: 2, kind: input, shape index: {}]   ;;  %s534_s3 = inlined_call_operand.vmem [shape: bf16[32,32], index: 3, kind: input, shape index: {}]   ;;  %s535_s5 = inlined_call_operand.vmem [shape: f32[64,1], index: 5, kind: output, shape index: {}]  }
   0x1   :  { %v349_v0 = vld [vmem:[%s530_s1] sm:$0xf]  ;;  %v379_v1 = vld [vmem:[%s530_s1] sm:$0x10]  ;;  %v61_v3 = vsel %vm59_vm0, 4294967295, %v394_v2  ;;  %v22_v7 = vld [vmem:[%s531_s0 + $0x8] sm:$0xff] }
   0x2   :  { %v350_v4 = vor.u32 %v379_v1, %v349_v0  ;;  %v62_v5 = vsel %vm60_vm1, %v61_v3, 0  ;;  %v21_v6 = vld [vmem:[%s531_s0] sm:$0xff]  ;;  %v23_v10 = vld [vmem:[%s531_s0 + $0x10] sm:$0xff]  ;;  %v24_v11 = vld [vmem:[%s531_s0 + $0x18] sm:$0xff]  ;;  %vm140_vm5 = vcmask 261120  }
   0x3   :  { %v29_v9 = vpack.c.bf16 %v22_v7, %v21_v6  ;;  %v30_v12 = vpack.c.bf16 %v24_v11, %v23_v10  ;;  %v25_v13 = vld [vmem:[%s531_s0 + $0x20] sm:$0xff]  ;;  %v26_v14 = vld [vmem:[%s531_s0 + $0x28] sm:$0xff]  ;;  %v27_v16 = vld [vmem:[%s531_s0 + $0x30] sm:$0xff] }
   0x4   :  { %v64_v8 = vand.u32 %v350_v4, %v62_v5  ;;  %v31_v15 = vpack.c.bf16 %v26_v14, %v25_v13  ;;  %v28_v17 = vld [vmem:[%s531_s0 + $0x38] sm:$0xff]  ;;  %v381_v19 = vld [vmem:[%s533_s2 + $0x8] sm:$0xff]  ;;  %v380_v20 = vld [vmem:[%s533_s2] sm:$0xff] }
   0x5   :  { %v32_v18 = vpack.c.bf16 %v28_v17, %v27_v16  ;;  %159 = vmatpush.bf16.msra.mxu1 %v381_v19  ;;  %384 = vmatpush.bf16.msra.mxu3 %v381_v19  ;;  %v389_v22 = vld [vmem:[%s532_s4] ss:$0 sm:$0xff]  ;;  %v383_v58 = vld [vmem:[%s534_s3 + $0x8] sm:$0xff]  ;;  %v390_v61 = vld [vmem:[%s532_s4 + $0x1] ss:$0 sm:$0xff] }
   0x6   :  { %73 = vmatpush.bf16.msra.mxu0 %v64_v8  ;;  %386 = vmatpush.bf16.msra.mxu2 %v383_v58  ;;  %v382_v59 = vld [vmem:[%s534_s3] sm:$0xff] }
   0x9   :  { %351 = vmatmul.msk.bf16.vlgmr.msra.gmra.mxu0 %vm46_vm2, %v29_v9  ;;  %160 = vmatpush.bf16.msra.mxu1 %v380_v20 }
   0xa   :  { %385 = vmatpush.bf16.msra.mxu3 %v380_v20  ;;  %387 = vmatpush.bf16.msra.mxu2 %v382_v59 }
   0xd   :  { %245 = vmatpush.bf16.msrb.mxu1 %v383_v58 }
  0x11   :  { %246 = vmatpush.bf16.msrb.mxu1 %v382_v59 }
  0x19   :  { %352 = vmatmul.msk.bf16.gmra.mxu0 %vm46_vm2, %v30_v12 }
  0x29   :  { %353 = vmatmul.msk.bf16.gmra.mxu0 %vm46_vm2, %v31_v15 }
  0x39   :  { %354 = vmatmul.msk.bf16.gmra.mxu0 %vm46_vm2, %v32_v18 }
  0x86   :  { %v75_v21 = vpop.f32.mrf.mxu0 }
  0x87   :  { %v76_v23 = vadd.f32 %v389_v22, %v75_v21 }
  0x89   :  { %v103_v25 = vmul.f32 0.01, %v76_v23  ;;  %vm95_vm3 = vcmp.gt.f32.partialorder %v76_v23, 0.0 }
  0x8b   :  { %v111_v28 = vsel %vm95_vm3, %v76_v23, %v103_v25 }
  0x8e   :  { %v77_v24 = vpop.f32.mrf.mxu0 }
  0x8f   :  { %v78_v26 = vadd.f32 %v389_v22, %v77_v24 }
  0x91   :  { %vm96_vm4 = vcmp.gt.f32.partialorder %v78_v26, 0.0  ;;  %v104_v27 = vmul.f32 0.01, %v78_v26 }
  0x93   :  { %v112_v29 = vsel %vm96_vm4, %v78_v26, %v104_v27 }
  0x94   :  { %v119_v30 = vpack.c.bf16 %v112_v29, %v111_v28 }
  0x96   :  { %v80_v31 = vpop.f32.mrf.mxu0  ;;  %363 = vmatmul.msk.bf16.vlgmr.msra.gmra.mxu1 %vm140_vm5, %v119_v30 }
  0x97   :  { %v81_v32 = vadd.f32 %v389_v22, %v80_v31 }
  0x99   :  { %v105_v34 = vmul.f32 0.01, %v81_v32  ;;  %vm97_vm6 = vcmp.gt.f32.partialorder %v81_v32, 0.0 }
  0x9b   :  { %v113_v37 = vsel %vm97_vm6, %v81_v32, %v105_v34 }
  0x9e   :  { %v82_v33 = vpop.f32.mrf.mxu0 }
  0x9f   :  { %v83_v35 = vadd.f32 %v389_v22, %v82_v33  ;;  %v391_v33 = vld [vmem:[%s532_s4 + $0x2] ss:$0 sm:$0xff] }
  0xa1   :  { %vm98_vm7 = vcmp.gt.f32.partialorder %v83_v35, 0.0  ;;  %v106_v36 = vmul.f32 0.01, %v83_v35 }
  0xa3   :  { %v114_v38 = vsel %vm98_vm7, %v83_v35, %v106_v36  ;;  %v392_v36 = vld [vmem:[%s532_s4 + $0x3] ss:$0 sm:$0xff] }
  0xa4   :  { %v120_v39 = vpack.c.bf16 %v114_v38, %v113_v37 }
  0xa6   :  { %v85_v40 = vpop.f32.mrf.mxu0  ;;  %364 = vmatmul.msk.bf16.vlgmr.msra.gmra.mxu3 %vm140_vm5, %v120_v39 }
  0xa7   :  { %v86_v41 = vadd.f32 %v389_v22, %v85_v40 }
  0xa9   :  { %v107_v43 = vmul.f32 0.01, %v86_v41  ;;  %vm99_vm8 = vcmp.gt.f32.partialorder %v86_v41, 0.0 }
  0xab   :  { %v115_v46 = vsel %vm99_vm8, %v86_v41, %v107_v43 }
  0xae   :  { %v87_v42 = vpop.f32.mrf.mxu0 }
  0xaf   :  { %v88_v44 = vadd.f32 %v389_v22, %v87_v42 }
  0xb1   :  { %vm100_vm9 = vcmp.gt.f32.partialorder %v88_v44, 0.0  ;;  %v108_v45 = vmul.f32 0.01, %v88_v44 }
  0xb3   :  { %v116_v47 = vsel %vm100_vm9, %v88_v44, %v108_v45 }
  0xb4   :  { %v121_v48 = vpack.c.bf16 %v116_v47, %v115_v46 }
  0xb6   :  { %v90_v49 = vpop.f32.mrf.mxu0  ;;  %365 = vmatmul.msk.bf16.gmra.mxu3 %vm140_vm5, %v121_v48 }
  0xb7   :  { %v91_v50 = vadd.f32 %v389_v22, %v90_v49 }
  0xb9   :  { %v109_v52 = vmul.f32 0.01, %v91_v50  ;;  %vm101_vm10 = vcmp.gt.f32.partialorder %v91_v50, 0.0 }
  0xbb   :  { %v117_v55 = vsel %vm101_vm10, %v91_v50, %v109_v52 }
  0xbe   :  { %v92_v51 = vpop.f32.mrf.mxu0 }
  0xbf   :  { %v93_v53 = vadd.f32 %v389_v22, %v92_v51 }
  0xc1   :  { %vm102_vm11 = vcmp.gt.f32.partialorder %v93_v53, 0.0  ;;  %v110_v54 = vmul.f32 0.01, %v93_v53 }
  0xc3   :  { %v118_v56 = vsel %vm102_vm11, %v93_v53, %v110_v54 }
  0xc4   :  { %v122_v57 = vpack.c.bf16 %v118_v56, %v117_v55 }
  0xc6   :  { %366 = vmatmul.msk.bf16.gmra.mxu3 %vm140_vm5, %v122_v57 }
 0x113   :  { %v162_v60 = vpop.f32.mrf.mxu1 }
 0x114   :  { %v163_v62 = vadd.f32 %v390_v61, %v162_v60 }
 0x116   :  { %v190_v0 = vmul.f32 0.01, %v163_v62  ;;  %vm182_vm12 = vcmp.gt.f32.partialorder %v163_v62, 0.0 }
 0x118   :  { %v198_v3 = vsel %vm182_vm12, %v163_v62, %v190_v0 }
 0x11b   :  { %v164_v63 = vpop.f32.mrf.mxu1 }
 0x11c   :  { %v165_v1 = vadd.f32 %v390_v61, %v164_v63 }
 0x11e   :  { %vm183_vm13 = vcmp.gt.f32.partialorder %v165_v1, 0.0  ;;  %v191_v2 = vmul.f32 0.01, %v165_v1 }
 0x120   :  { %v199_v4 = vsel %vm183_vm13, %v165_v1, %v191_v2  ;;  %vm334_vm13 = vcmask 7168  }
 0x121   :  { %v206_v5 = vpack.c.bf16 %v199_v4, %v198_v3 }
 0x123   :  { %375 = vmatmul.msk.bf16.vlgmr.msrb.gmra.mxu1 %vm140_vm5, %v206_v5 }
 0x129   :  { %v167_v6 = vpop.f32.mrf.mxu3 }
 0x12a   :  { %v168_v7 = vadd.f32 %v390_v61, %v167_v6 }
 0x12c   :  { %v192_v9 = vmul.f32 0.01, %v168_v7  ;;  %vm184_vm14 = vcmp.gt.f32.partialorder %v168_v7, 0.0 }
 0x12e   :  { %v200_v12 = vsel %vm184_vm14, %v168_v7, %v192_v9 }
 0x131   :  { %v169_v8 = vpop.f32.mrf.mxu3 }
 0x132   :  { %v170_v10 = vadd.f32 %v390_v61, %v169_v8 }
 0x134   :  { %vm185_vm15 = vcmp.gt.f32.partialorder %v170_v10, 0.0  ;;  %v193_v11 = vmul.f32 0.01, %v170_v10 }
 0x136   :  { %v201_v13 = vsel %vm185_vm15, %v170_v10, %v193_v11 }
 0x137   :  { %v207_v14 = vpack.c.bf16 %v201_v13, %v200_v12 }
 0x139   :  { %v172_v15 = vpop.f32.mrf.mxu3  ;;  %376 = vmatmul.msk.bf16.vlgmr.msra.gmra.mxu2 %vm140_vm5, %v207_v14 }
 0x13a   :  { %v173_v16 = vadd.f32 %v390_v61, %v172_v15 }
 0x13c   :  { %v194_v18 = vmul.f32 0.01, %v173_v16  ;;  %vm186_vm0 = vcmp.gt.f32.partialorder %v173_v16, 0.0 }
 0x13e   :  { %v202_v21 = vsel %vm186_vm0, %v173_v16, %v194_v18 }
 0x141   :  { %v174_v17 = vpop.f32.mrf.mxu3 }
 0x142   :  { %v175_v19 = vadd.f32 %v390_v61, %v174_v17 }
 0x144   :  { %vm187_vm1 = vcmp.gt.f32.partialorder %v175_v19, 0.0  ;;  %v195_v20 = vmul.f32 0.01, %v175_v19 }
 0x146   :  { %v203_v22 = vsel %vm187_vm1, %v175_v19, %v195_v20  ;;  %v393_v19 = vld [vmem:[%s532_s4 + $0x4] ss:$0 sm:$0xff] }
 0x147   :  { %v208_v23 = vpack.c.bf16 %v203_v22, %v202_v21 }
 0x149   :  { %v177_v24 = vpop.f32.mrf.mxu3  ;;  %377 = vmatmul.msk.bf16.gmra.mxu2 %vm140_vm5, %v208_v23 }
 0x14a   :  { %v178_v25 = vadd.f32 %v390_v61, %v177_v24 }
 0x14c   :  { %v196_v27 = vmul.f32 0.01, %v178_v25  ;;  %vm188_vm2 = vcmp.gt.f32.partialorder %v178_v25, 0.0 }
 0x14e   :  { %v204_v30 = vsel %vm188_vm2, %v178_v25, %v196_v27 }
 0x151   :  { %v179_v26 = vpop.f32.mrf.mxu3 }
 0x152   :  { %v180_v28 = vadd.f32 %v390_v61, %v179_v26 }
 0x154   :  { %vm189_vm3 = vcmp.gt.f32.partialorder %v180_v28, 0.0  ;;  %v197_v29 = vmul.f32 0.01, %v180_v28 }
 0x156   :  { %v205_v31 = vsel %vm189_vm3, %v180_v28, %v197_v29 }
 0x157   :  { %v209_v32 = vpack.c.bf16 %v205_v31, %v204_v30 }
 0x159   :  { %378 = vmatmul.msk.bf16.gmra.mxu2 %vm140_vm5, %v209_v32 }
 0x1a0   :  { %v248_v34 = vpop.f32.mrf.mxu1 }
 0x1a1   :  { %v249_v35 = vadd.f32 %v391_v33, %v248_v34 }
 0x1a3   :  { %v276_v37 = vmul.f32 0.01, %v249_v35  ;;  %vm268_vm4 = vcmp.gt.f32.partialorder %v249_v35, 0.0 }
 0x1a5   :  { %v284_v38 = vsel %vm268_vm4, %v249_v35, %v276_v37 }
 0x1a6   :  { %v293_v39 = vmul.f32 %v392_v36, %v284_v38 }
 0x1a8   :  { %v250_v40 = vpop.f32.mrf.mxu1  ;;  %v301_v41 = vsel %vm140_vm5, %v293_v39, 0.0 }
 0x1a9   :  { %v251_v42 = vadd.f32 %v391_v33, %v250_v40  ;;  %302 = vadd.xlane.f32.xlu0 %v301_v41 }
 0x1ab   :  { %vm269_vm6 = vcmp.gt.f32.partialorder %v251_v42, 0.0  ;;  %v277_v43 = vmul.f32 0.01, %v251_v42 }
 0x1ad   :  { %v285_v44 = vsel %vm269_vm6, %v251_v42, %v277_v43 }
 0x1ae   :  { %v294_v45 = vmul.f32 %v392_v36, %v285_v44 }
 0x1b0   :  { %v304_v46 = vsel %vm140_vm5, %v294_v45, 0.0 }
 0x1b1   :  { %305 = vadd.xlane.f32.xlu0 %v304_v46 }
 0x1bc   :  { %v253_v47 = vpop.f32.mrf.mxu2 }
 0x1bd   :  { %v254_v48 = vadd.f32 %v391_v33, %v253_v47 }
 0x1bf   :  { %v278_v49 = vmul.f32 0.01, %v254_v48  ;;  %vm270_vm7 = vcmp.gt.f32.partialorder %v254_v48, 0.0 }
 0x1c1   :  { %v286_v50 = vsel %vm270_vm7, %v254_v48, %v278_v49 }
 0x1c2   :  { %v295_v51 = vmul.f32 %v392_v36, %v286_v50 }
 0x1c4   :  { %v255_v52 = vpop.f32.mrf.mxu2  ;;  %v307_v53 = vsel %vm140_vm5, %v295_v51, 0.0 }
 0x1c5   :  { %v256_v54 = vadd.f32 %v391_v33, %v255_v52  ;;  %308 = vadd.xlane.f32.xlu1 %v307_v53 }
 0x1c7   :  { %vm271_vm8 = vcmp.gt.f32.partialorder %v256_v54, 0.0  ;;  %v279_v55 = vmul.f32 0.01, %v256_v54 }
 0x1c9   :  { %v287_v56 = vsel %vm271_vm8, %v256_v54, %v279_v55 }
 0x1ca   :  { %v296_v57 = vmul.f32 %v392_v36, %v287_v56 }
 0x1cc   :  { %v258_v58 = vpop.f32.mrf.mxu2  ;;  %v310_v59 = vsel %vm140_vm5, %v296_v57, 0.0 }
 0x1cd   :  { %v259_v60 = vadd.f32 %v391_v33, %v258_v58  ;;  %311 = vadd.xlane.f32.xlu1 %v310_v59 }
 0x1cf   :  { %v280_v61 = vmul.f32 0.01, %v259_v60  ;;  %vm272_vm9 = vcmp.gt.f32.partialorder %v259_v60, 0.0 }
 0x1d1   :  { %v288_v62 = vsel %vm272_vm9, %v259_v60, %v280_v61 }
 0x1d2   :  { %v297_v63 = vmul.f32 %v392_v36, %v288_v62 }
 0x1d4   :  { %v260_v0 = vpop.f32.mrf.mxu2  ;;  %v313_v1 = vsel %vm140_vm5, %v297_v63, 0.0 }
 0x1d5   :  { %v261_v2 = vadd.f32 %v391_v33, %v260_v0  ;;  %314 = vadd.xlane.f32.xlu2 %v313_v1 }
 0x1d7   :  { %vm273_vm10 = vcmp.gt.f32.partialorder %v261_v2, 0.0  ;;  %v281_v3 = vmul.f32 0.01, %v261_v2 }
 0x1d9   :  { %v289_v4 = vsel %vm273_vm10, %v261_v2, %v281_v3 }
 0x1da   :  { %v298_v5 = vmul.f32 %v392_v36, %v289_v4 }
 0x1dc   :  { %v263_v6 = vpop.f32.mrf.mxu2  ;;  %v316_v7 = vsel %vm140_vm5, %v298_v5, 0.0 }
 0x1dd   :  { %v264_v8 = vadd.f32 %v391_v33, %v263_v6  ;;  %317 = vadd.xlane.f32.xlu2 %v316_v7 }
 0x1df   :  { %vm274_vm11 = vcmp.gt.f32.partialorder %v264_v8, 0.0  ;;  %v282_v9 = vmul.f32 0.01, %v264_v8 }
 0x1e1   :  { %v290_v10 = vsel %vm274_vm11, %v264_v8, %v282_v9 }
 0x1e2   :  { %v299_v11 = vmul.f32 %v392_v36, %v290_v10 }
 0x1e4   :  { %v265_v12 = vpop.f32.mrf.mxu2  ;;  %v319_v13 = vsel %vm140_vm5, %v299_v11, 0.0 }
 0x1e5   :  { %v266_v14 = vadd.f32 %v391_v33, %v265_v12  ;;  %320 = vadd.xlane.f32.xlu0 %v319_v13 }
 0x1e7   :  { %vm275_vm12 = vcmp.gt.f32.partialorder %v266_v14, 0.0  ;;  %v283_v15 = vmul.f32 0.01, %v266_v14 }
 0x1e9   :  { %v291_v16 = vsel %vm275_vm12, %v266_v14, %v283_v15 }
 0x1ea   :  { %v300_v17 = vmul.f32 %v392_v36, %v291_v16 }
 0x1ec   :  { %v322_v18 = vsel %vm140_vm5, %v300_v17, 0.0 }
 0x1ed   :  { %323 = vadd.xlane.f32.xlu1 %v322_v18 }
 0x21c   :  { %v303_v20 = vpop.xlane.xlu0 %302 }
 0x21d   :  { %v326_v21 = vadd.f32 %v393_v19, %v303_v20 }
 0x21f   :  { %335 = vst.msk [vmem:[%s535_s5] sm:$0xff] %vm334_vm13, %v326_v21 }
 0x224   :  { %v306_v22 = vpop.xlane.xlu0 %305 }
 0x225   :  { %v327_v23 = vadd.f32 %v393_v19, %v306_v22 }
 0x227   :  { %336 = vst.msk [vmem:[%s535_s5 + $0x8] sm:$0xff] %vm334_vm13, %v327_v23 }
 0x238   :  { %v309_v24 = vpop.xlane.xlu1 %308 }
 0x239   :  { %v328_v25 = vadd.f32 %v393_v19, %v309_v24 }
 0x23b   :  { %337 = vst.msk [vmem:[%s535_s5 + $0x10] sm:$0xff] %vm334_vm13, %v328_v25 }
 0x240   :  { %v312_v26 = vpop.xlane.xlu1 %311 }
 0x241   :  { %v329_v27 = vadd.f32 %v393_v19, %v312_v26 }
 0x243   :  { %338 = vst.msk [vmem:[%s535_s5 + $0x18] sm:$0xff] %vm334_vm13, %v329_v27 }
 0x248   :  { %v315_v28 = vpop.xlane.xlu2 %314 }
 0x249   :  { %v330_v29 = vadd.f32 %v393_v19, %v315_v28 }
 0x24b   :  { %339 = vst.msk [vmem:[%s535_s5 + $0x20] sm:$0xff] %vm334_vm13, %v330_v29 }
 0x250   :  { %v318_v30 = vpop.xlane.xlu2 %317 }
 0x251   :  { %v331_v31 = vadd.f32 %v393_v19, %v318_v30 }
 0x253   :  { %340 = vst.msk [vmem:[%s535_s5 + $0x28] sm:$0xff] %vm334_vm13, %v331_v31 }
 0x258   :  { %v321_v32 = vpop.xlane.xlu0 %320 }
 0x259   :  { %v332_v33 = vadd.f32 %v393_v19, %v321_v32 }
 0x25b   :  { %341 = vst.msk [vmem:[%s535_s5 + $0x30] sm:$0xff] %vm334_vm13, %v332_v33 }
 0x260   :  { %v324_v34 = vpop.xlane.xlu1 %323 }
 0x261   :  { %v333_v35 = vadd.f32 %v393_v19, %v324_v34 }
 0x263   :  { %342 = vst.msk [vmem:[%s535_s5 + $0x38] sm:$0xff] %vm334_vm13, %v333_v35 }

</bundles_post_ra>
